<compile_context>
chip_gen: v7x
topology: tpu7x:2x2x1
jax: 0.10.0
libtpu: 0.0.40
codegen_flags: <defaults>
</compile_context>

<pallas_src>
import functools

import jax
import jax.numpy as jnp
from jax import lax
from jax.experimental import pallas as pl
from jax.experimental.pallas import tpu as pltpu


def _silu(z):
    # z * sigmoid(z); the reciprocal goes to the EUP slot (approx) instead of VALU.
    return z * pl.reciprocal(1.0 + jnp.exp(-z), approx=True)


# --------------------------------------------------------------------------------------
# cv1: 1x1 conv + folded BN + SiLU.  Reads NCHW input directly as (C1, rows) slabs,
# computes w1^T @ x on the MXU (bf16 inputs, f32 accum), writes y0 channel-major (bf16).
# --------------------------------------------------------------------------------------

def _cv1_kernel(x_ref, w_ref, s_ref, b_ref, o_ref):
    x = x_ref[0].astype(jnp.bfloat16)                                 # (C1, t)
    z = jnp.dot(w_ref[...], x, preferred_element_type=jnp.float32)    # (Cm, t) f32
    z = z * s_ref[...] + b_ref[...]                                   # folded BatchNorm
    o_ref[0] = _silu(z).astype(o_ref.dtype)


def cv1_conv_bn_silu(x3, w1t, s1c, b1c, *, t_rows=1024):
    """x3: (N, C1, M) any float; w1t: (Cm, C1) bf16; s1c/b1c: (Cm, 1) f32 -> (N, Cm, M) bf16."""
    N, C1, M = x3.shape
    Cm = w1t.shape[0]
    if M <= t_rows:
        t = M                                         # one full-M block, no tail waste
    else:
        nt = pl.cdiv(M, t_rows)                       # balanced 128-multiple tiles
        t = 128 * pl.cdiv(M, 128 * nt)
    grid = (N, pl.cdiv(M, t))
    return pl.pallas_call(
        _cv1_kernel,
        out_shape=jax.ShapeDtypeStruct((N, Cm, M), jnp.bfloat16),
        grid_spec=pltpu.PrefetchScalarGridSpec(
            num_scalar_prefetch=0,
            grid=grid,
            in_specs=[
                pl.BlockSpec((1, C1, t), lambda n, j: (n, 0, j)),
                pl.BlockSpec((Cm, C1), lambda n, j: (0, 0)),
                pl.BlockSpec((Cm, 1), lambda n, j: (0, 0)),
                pl.BlockSpec((Cm, 1), lambda n, j: (0, 0)),
            ],
            out_specs=pl.BlockSpec((1, Cm, t), lambda n, j: (n, 0, j)),
        ),
        compiler_params=pltpu.CompilerParams(
            dimension_semantics=("parallel", "parallel"),
            vmem_limit_bytes=48 * 1024 * 1024,
        ),
    )(x3, w1t, s1c, b1c)


# --------------------------------------------------------------------------------------
# Fused tail: triple 5x5/stride-1/pad-2 max-pool + cv2 (1x1 conv + BN + SiLU).
# Grid = (N, C2//tco, Cm//tc); the channel-tile axis (last) is the cv2 reduction, so
# y1/y2/y3 and the channel concat never hit HBM.  The C2-tile axis is "parallel" so
# both v7x TensorCores are busy even at N == 1.  Output is written channel-major (NCHW).
# --------------------------------------------------------------------------------------

def _pool_cv2_kernel(H, W, bf16_pool, y_ref, w2_ref, s_ref, b_ref, o_ref, acc_ref):
    M = H * W
    c = pl.program_id(2)

    @pl.when(c == 0)
    def _():
        acc_ref[...] = jnp.zeros_like(acc_ref)

    y0 = y_ref[0]                                                     # (tc, M) bf16
    pdt = jnp.bfloat16 if bf16_pool else jnp.float32

    # Hoisted once per grid step, shared by all 3 cascades: additive {0, -inf}
    # edge masks (1, M) in the pooling dtype.
    col = lax.broadcasted_iota(jnp.int32, (1, M), 1)                  # flattened index
    w_id = col % W
    h_id = col // W

    def emask(idx, d, bound):
        valid = jnp.logical_and(idx + d >= 0, idx + d < bound)
        return jnp.where(valid, 0.0, -jnp.inf).astype(pdt)            # (1, M)

    masks_w = [emask(w_id, d, W) for d in (-2, -1, 1, 2)]
    masks_h = [emask(h_id, d, H) for d in (-2, -1, 1, 2)]

    def pool5(a, masks, stride):
        # k=5 / stride-1 / pad-2 max along one spatial axis: shifted max with
        # additive -inf edge masks (cyclic lane roll), balanced max tree.
        t1 = jnp.maximum(pltpu.roll(a, (2 * stride) % M, 1) + masks[0],   # a[i-2s]
                         pltpu.roll(a, (1 * stride) % M, 1) + masks[1])   # a[i-1s]
        t2 = jnp.maximum(pltpu.roll(a, (-1 * stride) % M, 1) + masks[2],  # a[i+1s]
                         pltpu.roll(a, (-2 * stride) % M, 1) + masks[3])  # a[i+2s]
        return jnp.maximum(a, jnp.maximum(t1, t2))

    def pool5x5(a):
        return pool5(pool5(a, masks_w, 1), masks_h, W)

    def mxu_in(t):
        return t if bf16_pool else t.astype(jnp.bfloat16)

    acc = acc_ref[...]
    acc = acc + jnp.dot(w2_ref[0], y0, preferred_element_type=jnp.float32)
    y = y0 if bf16_pool else y0.astype(jnp.float32)
    y = pool5x5(y)                                                    # m(y0)
    acc = acc + jnp.dot(w2_ref[1], mxu_in(y), preferred_element_type=jnp.float32)
    y = pool5x5(y)                                                    # m(m(y0))
    acc = acc + jnp.dot(w2_ref[2], mxu_in(y), preferred_element_type=jnp.float32)
    y = pool5x5(y)                                                    # m(m(m(y0)))
    acc = acc + jnp.dot(w2_ref[3], mxu_in(y), preferred_element_type=jnp.float32)
    acc_ref[...] = acc

    @pl.when(c == pl.num_programs(2) - 1)
    def _():
        z = acc_ref[...] * s_ref[...] + b_ref[...]                    # folded BatchNorm
        o_ref[0] = _silu(z).astype(o_ref.dtype)                       # (tco, M) -> NCHW


def pool_cv2(y0, w2t, s2c, b2c, *, H, W, tc=None, tco=None,
             out_dtype=jnp.float32, bf16_pool=True):
    """y0: (N, Cm, M) bf16; w2t: (4, C2, Cm) bf16; s2c/b2c: (C2, 1) f32 -> (N, C2, M)."""
    N, Cm, M = y0.shape
    C2 = w2t.shape[1]
    # Channel-reduction tile: 256 fills the v6e/v7x 2x256x256 MXU contraction.
    if tc is None:
        tc = 256 if (Cm > 256 and Cm % 256 == 0) else Cm
    assert Cm % tc == 0 and (tc == Cm or tc % 128 == 0), (Cm, tc)
    # Output-channel tile: >=2 tiles gives v7x a second parallel grid axis at N == 1.
    if tco is None:
        tco = C2 // 2 if (C2 >= 256 and (C2 // 2) % 128 == 0) else C2
    assert C2 % tco == 0 and (tco == C2 or tco % 8 == 0), (C2, tco)
    nc = Cm // tc
    nco = C2 // tco
    kernel = functools.partial(_pool_cv2_kernel, H, W, bf16_pool)
    return pl.pallas_call(
        kernel,
        out_shape=jax.ShapeDtypeStruct((N, C2, M), out_dtype),
        grid_spec=pltpu.PrefetchScalarGridSpec(
            num_scalar_prefetch=0,
            grid=(N, nco, nc),
            in_specs=[
                pl.BlockSpec((1, tc, M), lambda n, co, c: (n, c, 0)),
                pl.BlockSpec((4, tco, tc), lambda n, co, c: (0, co, c)),
                pl.BlockSpec((tco, 1), lambda n, co, c: (co, 0)),
                pl.BlockSpec((tco, 1), lambda n, co, c: (co, 0)),
            ],
            out_specs=pl.BlockSpec((1, tco, M), lambda n, co, c: (n, co, 0)),
            scratch_shapes=[pltpu.VMEM((tco, M), jnp.float32)],
        ),
        compiler_params=pltpu.CompilerParams(
            dimension_semantics=("parallel", "parallel", "arbitrary"),
            vmem_limit_bytes=48 * 1024 * 1024,
        ),
    )(y0, w2t, s2c, b2c)


# --------------------------------------------------------------------------------------
# SPPF forward (NCHW in, NCHW out).  All host-side reshapes are metadata-only.
# --------------------------------------------------------------------------------------

def sppf_forward(x_nchw, w1, s1, b1, w2, s2, b2, *, tc=None, tco=None,
                 t_rows=1024, bf16_pool=True, out_dtype=jnp.float32):
    N, C1, H, W = x_nchw.shape
    Cm = w1.shape[1]
    C2 = w2.shape[1]
    assert w2.shape[0] == 4 * Cm
    M = H * W

    x3 = x_nchw.reshape(N, C1, M)                                  # native dtype, free reshape

    w1t = jnp.transpose(w1).astype(jnp.bfloat16)                   # (Cm, C1), tiny
    s1c = jnp.asarray(s1, jnp.float32).reshape(Cm, 1)
    b1c = jnp.asarray(b1, jnp.float32).reshape(Cm, 1)
    y0 = cv1_conv_bn_silu(x3, w1t, s1c, b1c, t_rows=t_rows)        # (N, Cm, M) bf16

    w2t = jnp.transpose(w2.reshape(4, Cm, C2), (0, 2, 1)).astype(jnp.bfloat16)
    s2c = jnp.asarray(s2, jnp.float32).reshape(C2, 1)
    b2c = jnp.asarray(b2, jnp.float32).reshape(C2, 1)
    out = pool_cv2(y0, w2t, s2c, b2c, H=H, W=W, tc=tc, tco=tco,
                   out_dtype=out_dtype, bf16_pool=bf16_pool)        # (N, C2, M)

    return out.reshape(N, C2, H, W)                                # free reshape


# --------------------------------------------------------------------------------------
# Plain-JAX reference (f32) for validation.
# --------------------------------------------------------------------------------------

def ref_sppf(x_nchw, w1, s1, b1, w2, s2, b2):
    x = jnp.transpose(x_nchw, (0, 2, 3, 1)).astype(jnp.float32)

    def pw(t, w, s, b):
        z = jnp.einsum("nhwc,cd->nhwd", t, w, precision=lax.Precision.HIGHEST)
        z = z * s[0] + b[0]
        return z * (1.0 / (1.0 + jnp.exp(-z)))

    def mp(t):
        return lax.reduce_window(t, -jnp.inf, lax.max, (1, 5, 5, 1), (1, 1, 1, 1),
                                 [(0, 0), (2, 2), (2, 2), (0, 0)])

    y0 = pw(x, w1, s1, b1)
    y1 = mp(y0)
    y2 = mp(y1)
    y3 = mp(y2)
    cat = jnp.concatenate([y0, y1, y2, y3], axis=-1)
    out = pw(cat, w2, s2, b2)
    return jnp.transpose(out, (0, 3, 1, 2))


def _make_params(key, c1, c2):
    c_ = c1 // 2
    eps = 1e-5  # PyTorch BatchNorm2d default eps
    k = jax.random.split(key, 10)
    w1 = jax.random.normal(k[0], (c1, c_), jnp.float32) / jnp.sqrt(c1)
    g1 = 1.0 + 0.1 * jax.random.normal(k[1], (c_,), jnp.float32)
    be1 = 0.1 * jax.random.normal(k[2], (c_,), jnp.float32)
    mu1 = 0.1 * jax.random.normal(k[3], (c_,), jnp.float32)
    var1 = jax.random.uniform(k[4], (c_,), jnp.float32, 0.5, 1.5)
    s1 = (g1 / jnp.sqrt(var1 + eps)).reshape(1, c_)
    b1 = (be1 - mu1 * g1 / jnp.sqrt(var1 + eps)).reshape(1, c_)
    w2 = jax.random.normal(k[5], (4 * c_, c2), jnp.float32) / jnp.sqrt(4 * c_)
    g2 = 1.0 + 0.1 * jax.random.normal(k[6], (c2,), jnp.float32)
    be2 = 0.1 * jax.random.normal(k[7], (c2,), jnp.float32)
    mu2 = 0.1 * jax.random.normal(k[8], (c2,), jnp.float32)
    var2 = jax.random.uniform(k[9], (c2,), jnp.float32, 0.5, 1.5)
    s2 = (g2 / jnp.sqrt(var2 + eps)).reshape(1, c2)
    b2 = (be2 - mu2 * g2 / jnp.sqrt(var2 + eps)).reshape(1, c2)
    return w1, s1, b1, w2, s2, b2


if __name__ == "__main__":
    key = jax.random.PRNGKey(0)
    kx1, kp1, kx2, kp2 = jax.random.split(key, 4)

    # Case 1: 256->256 channels, 16x16 map, N=2.  Exercises the split C2
    # ("parallel") axis (tco=128 -> 2 tiles) with a single reduction step.
    N, c1, c2, H, W = 2, 256, 256, 16, 16
    x = jax.random.normal(kx1, (N, c1, H, W), jnp.float32)
    params = _make_params(kp1, c1, c2)
    out = jax.block_until_ready(sppf_forward(x, *params))
    ref = ref_sppf(x, *params)
    assert out.shape == (N, c2, H, W), out.shape
    assert jnp.allclose(out, ref, atol=5e-2, rtol=5e-2), float(jnp.max(jnp.abs(out - ref)))

    # Same case through the f32-pooling fallback path (v5e: no bf16 VALU).
    out_f32 = jax.block_until_ready(sppf_forward(x, *params, bf16_pool=False))
    assert jnp.allclose(out_f32, ref, atol=5e-2, rtol=5e-2), \
        float(jnp.max(jnp.abs(out_f32 - ref)))

    # Case 2: N=1, 1024->512 channels, 20x20 map.  Exercises the channel-tiled
    # cv2 reduction (Cm=512, tc=256 -> 2 steps), tco=256 -> 2 output tiles, and a
    # non-128-multiple M=400 handled as a single full-M block in cv1.
    N, c1, c2, H, W = 1, 1024, 512, 20, 20
    x = jax.random.normal(kx2, (N, c1, H, W), jnp.float32)
    params = _make_params(kp2, c1, c2)
    out = jax.block_until_ready(sppf_forward(x, *params))
    ref = ref_sppf(x, *params)
    assert out.shape == (N, c2, H, W), out.shape
    assert jnp.allclose(out, ref, atol=5e-2, rtol=5e-2), float(jnp.max(jnp.abs(out - ref)))

    print("KERNEL_OK")
</pallas_src>

<mosaic_0001>
module attributes {stable_mosaic.version = 11 : i64} {
  func.func @_cv1_kernel(%arg0: i32, %arg1: i32, %arg2: memref<1x256x256xf32, #tpu.memory_space<vmem>>, %arg3: memref<128x256xbf16, #tpu.memory_space<vmem>>, %arg4: memref<128x1xf32, #tpu.memory_space<vmem>>, %arg5: memref<128x1xf32, #tpu.memory_space<vmem>>, %arg6: memref<1x128x256xbf16, #tpu.memory_space<vmem>>) attributes {dimension_semantics = [#tpu.dimension_semantics<parallel>, #tpu.dimension_semantics<parallel>], iteration_bounds = array<i64: 2, 1>, scalar_prefetch = 0 : i64, scratch_operands = 0 : i64, tpu.core_type = #tpu.core_type<tc>, window_params = [{transform_indices = @transform_0, window_bounds = array<i64: 1, 256, 256>}, {pipeline_mode = #tpu.pipeline_mode<synchronous>, transform_indices = @transform_1, window_bounds = array<i64: 128, 256>}, {pipeline_mode = #tpu.pipeline_mode<synchronous>, transform_indices = @transform_2, window_bounds = array<i64: 128, 1>}, {pipeline_mode = #tpu.pipeline_mode<synchronous>, transform_indices = @transform_3, window_bounds = array<i64: 128, 1>}, {transform_indices = @transform_4, window_bounds = array<i64: 1, 128, 256>}]} {
    %c0 = arith.constant 0 : index
    %c0_0 = arith.constant 0 : index
    %c0_1 = arith.constant 0 : index
    %0 = vector.load %arg2[%c0, %c0_0, %c0_1] : memref<1x256x256xf32, #tpu.memory_space<vmem>>, vector<1x256x256xf32>
    %1 = vector.shape_cast %0 : vector<1x256x256xf32> to vector<256x256xf32>
    %2 = arith.truncf %1 : vector<256x256xf32> to vector<256x256xbf16>
    %c0_2 = arith.constant 0 : index
    %c0_3 = arith.constant 0 : index
    %3 = vector.load %arg3[%c0_2, %c0_3] : memref<128x256xbf16, #tpu.memory_space<vmem>>, vector<128x256xbf16>
    %cst = arith.constant dense<0.000000e+00> : vector<128x256xf32>
    %4 = tpu.matmul %3, %2, %cst {dimension_numbers = #tpu.dot_dimension_numbers<[1], [0], [0], [1], [0, 0, 1, 1], [], []>} : vector<128x256xbf16>, vector<256x256xbf16>, vector<128x256xf32> -> vector<128x256xf32>
    %c0_4 = arith.constant 0 : index
    %c0_5 = arith.constant 0 : index
    %5 = vector.load %arg4[%c0_4, %c0_5] : memref<128x1xf32, #tpu.memory_space<vmem>>, vector<128x1xf32>
    %6 = vector.broadcast %5 : vector<128x1xf32> to vector<128x256xf32>
    %7 = arith.mulf %4, %6 : vector<128x256xf32>
    %c0_6 = arith.constant 0 : index
    %c0_7 = arith.constant 0 : index
    %8 = vector.load %arg5[%c0_6, %c0_7] : memref<128x1xf32, #tpu.memory_space<vmem>>, vector<128x1xf32>
    %9 = vector.broadcast %8 : vector<128x1xf32> to vector<128x256xf32>
    %10 = arith.addf %7, %9 : vector<128x256xf32>
    %cst_8 = arith.constant 0.000000e+00 : f32
    %11 = vector.broadcast %cst_8 : f32 to vector<128x256xf32>
    %12 = arith.subf %11, %10 : vector<128x256xf32>
    %13 = math.exp %12 : vector<128x256xf32>
    %cst_9 = arith.constant 1.000000e+00 : f32
    %14 = vector.broadcast %cst_9 : f32 to vector<128x256xf32>
    %15 = arith.addf %14, %13 : vector<128x256xf32>
    %16 = tpu.reciprocal %15 {approx = true} : vector<128x256xf32> -> vector<128x256xf32>
    %17 = arith.mulf %10, %16 : vector<128x256xf32>
    %18 = arith.truncf %17 : vector<128x256xf32> to vector<128x256xbf16>
    %c0_10 = arith.constant 0 : index
    %c0_11 = arith.constant 0 : index
    %c0_12 = arith.constant 0 : index
    %19 = vector.load %arg6[%c0_10, %c0_11, %c0_12] : memref<1x128x256xbf16, #tpu.memory_space<vmem>>, vector<1x128x256xbf16>
    %20 = vector.shape_cast %19 : vector<1x128x256xbf16> to vector<128x256xbf16>
    %21 = vector.shape_cast %18 : vector<128x256xbf16> to vector<1x128x256xbf16>
    tpu.vector_store %arg6[%c0_10, %c0_11, %c0_12], %21 {strides = array<i32>} : memref<1x128x256xbf16, #tpu.memory_space<vmem>>, vector<1x128x256xbf16>,
    return
  }
  func.func @transform_0(%arg0: i32, %arg1: i32) -> (i32, i32, i32) {
    %c0_i32 = arith.constant 0 : i32
    %c0_i32_0 = arith.constant 0 : i32
    return %arg0, %c0_i32, %arg1 : i32, i32, i32
  }
  func.func @transform_1(%arg0: i32, %arg1: i32) -> (i32, i32) {
    %c0_i32 = arith.constant 0 : i32
    %c0_i32_0 = arith.constant 0 : i32
    %c0_i32_1 = arith.constant 0 : i32
    return %c0_i32, %c0_i32_0 : i32, i32
  }
  func.func @transform_2(%arg0: i32, %arg1: i32) -> (i32, i32) {
    %c0_i32 = arith.constant 0 : i32
    %c0_i32_0 = arith.constant 0 : i32
    %c0_i32_1 = arith.constant 0 : i32
    return %c0_i32, %c0_i32_0 : i32, i32
  }
  func.func @transform_3(%arg0: i32, %arg1: i32) -> (i32, i32) {
    %c0_i32 = arith.constant 0 : i32
    %c0_i32_0 = arith.constant 0 : i32
    %c0_i32_1 = arith.constant 0 : i32
    return %c0_i32, %c0_i32_0 : i32, i32
  }
  func.func @transform_4(%arg0: i32, %arg1: i32) -> (i32, i32, i32) {
    %c0_i32 = arith.constant 0 : i32
    %c0_i32_0 = arith.constant 0 : i32
    return %arg0, %c0_i32, %arg1 : i32, i32, i32
  }
}

</mosaic_0001>

<bundles_post_ra>
// kernel: tpu_custom_call.1
= control target key start
LH: loop header
LB: loop body
LE: loop exit
PB: predicated region body
PF: predicated region fallthrough
CT: control target
= control target key end

     0   :  { %9 = vsyncpa [#allocation3], 0  ;;  %s2309_s0 = inlined_call_operand.hbm [shape: f32[2,256,256], index: 0, kind: input, shape index: {}]   ;;  %s2310_s1 = inlined_call_operand.vmem [shape: bf16[128,256], index: 1, kind: input, shape index: {}]   ;;  %s2311_s2 = inlined_call_operand.vmem [shape: f32[128,1], index: 2, kind: input, shape index: {}]   ;;  %s2312_s3 = inlined_call_operand.vmem [shape: f32[128,1], index: 3, kind: input, shape index: {}]   ;;  %s2313_s4 = inlined_call_operand.hbm [shape: bf16[2,128,256], index: 4, kind: output, shape index: {}]  }
   0x1   :  { %11 = vsyncpa [#allocation3 + $0x1], 0 }
   0x2   :  { %12 = vsyncpa [#allocation4], 0 }
   0x3   :  { %14 = vsyncpa [#allocation4 + $0x1], 0  ;;  %s1668_s15 = smov 0   ;;  %s1670_s16 = smov 0  }
   0x4   :  { %s1672_s17 = smov 0   ;;  %s1674_s18 = smov 0  }
   0x5   :  { %s1676_s19 = smov 0   ;;  %s1678_s20 = smov 0  }
   0x6 LB: > { %s1204_s21 = sadd.s32 4294967295, %s1634_s20   ;;  %s1205_s22 = sadd.s32 4294967294, %s1634_s20   ;;  %s1634_s20 = sphi %s1678_s20, %s20_s20   ;;  %s1630_s19 = sphi %s1676_s19, %s2328_s19   ;;  %s1626_s18 = sphi %s1674_s18, %s2327_s18   ;;  %s1622_s17 = sphi %s1672_s17, %s2326_s17   ;;  %s1618_s16 = sphi %s1670_s16, %s2325_s16   ;;  %s1614_s15 = sphi %s1668_s15, %s2324_s15  }
   0x7   : > { %s32_s23 = sadd.s32 1, %s1630_s19  ;;  %s41_s24 = sadd.s32 1, %s1622_s17 }
   0x8   : > { %p34_p0 = scmp.ge.s32.totalorder %s32_s23, 2  ;;  %p48_p1 = scmp.ne.s32.totalorder %s1622_s17, %s1618_s16 }
   0x9   : > { %p49_p2 = scmp.eq.s32.totalorder %s1634_s20, 0  ;;  %p54_p3 = scmp.ne.s32.totalorder %s1618_s16, %s1614_s15 }
   0xa   : > { %s2330_s23 = smov (%p34_p0, %s32_s23), 0  ;;  %p55_p5 = scmp.eq.s32.totalorder %s1204_s21, 0 }
   0xb   : > { %p1709_p4 = por %p49_p2, %p48_p1  ;;  %s36_s26 = ssub.s32 %s1630_s19, %s2330_s23 }
   0xc   : > { %p143_p6 = scmp.eq.s32.totalorder %s1204_s21, 1  ;;  %p39_p7 = scmp.eq.s32.totalorder %s36_s26, 0 }
   0xd   : > { %p1715_p8 = por %p55_p5, %p54_p3  ;;  %p149_p10 = scmp.eq.s32.totalorder %s1205_s22, 1 }
   0xe   : > { %p1719_p9 = por %p143_p6, %p48_p1  ;;  %p1313_p13 = scmp.lt.s32.totalorder %s1634_s20, 2 }
   0xf   : > { %s1724_s29 = scalar_select %p39_p7, %s1622_s17, %s41_s24  }
  0x10   : > { %s2317_s28 = scalar_select %p1719_p9, 1, 0 }
  0x11   : > { %p1726_p11 = por %p149_p10, %p54_p3  ;;  %s178_s5 = sand.u32 1, %s1622_s17  }
  0x12   : > { %s1208_s6 = sshll.u32 %s178_s5, 9  ;;  %s1251_s7 = sshll.u32 %s1630_s19, 13 }
  0x13   : > { %s2318_s30 = scalar_select %p1726_p11, 1, 0 }
  0x14   : > { %s1737_s10 = scalar_lea.hbm %s2309_s0, %s1251_s7  ;;  %s182_s11 = scalar_lea.vmem [#allocation2], %s1208_s6 }
  0x15   : > { %s191_s12 = sshll.u32 %s182_s11, 4  ;;  %p1743_p0 = pnand %p1313_p13, %p1709_p4  ;;  %s1739_s12 = int_to_ptr.vmem [resolvable:$true] %s191_s12 }
  0x16   : > { %s1748_s14 = scalar_lea.sflag [#allocation3], %s178_s5  ;;  %s1522_s21 = scalar_lea.hbm %s1737_s10, 8192 }
  0x17   : > { %p1523_p2 = scmp.ne.s32.totalorder %s1737_s10, %s1522_s21  ;;  %p1524_p3 = pneg %p1743_p0 }
  0x18   : > { %s1527_s25 = scalar_lea.hbm %s2309_s0, 16384  ;;  %p1528_p4 = scmp.lt.u32.totalorder %s1737_s10, %s2309_s0 }
  0x19   : > { %p1525_p5 = pnand %p1524_p3, %p1523_p2  ;;  %p1529_p7 = scmp.lt.u32.totalorder %s1527_s25, %s1522_s21 }
  0x1a   : > { %p1531_p13 = scmp.lt.u32.totalorder %s1522_s21, %s1737_s10 }
  0x1b   : > { %p1526_p6 = pneg %p1525_p5  ;;  %p1530_p10 = por %p1529_p7, %p1528_p4 }
  0x1d   : > { %p1532_p12 = por %p1531_p13, %p1530_p10 }
  0x1f   : > { %p1533_p1 = pnand %p1532_p12, %p1526_p6 }
  0x21   : > { %1536 = shalt.err (!%p1533_p1)
}
  0x22   : > { %s1537_s5 = scalar_lea.vmem %s1739_s12, 8192  ;;  %s1636_s7 = smov [#allocation2]  }
  0x23   : > { %p1538_p2 = scmp.ne.s32.totalorder %s1739_s12, %s1537_s5  ;;  %s1542_s8 = sshll.u32 %s1636_s7, 4  ;;  %s1543_s8 = int_to_ptr.vmem [resolvable:$false] %s1542_s8 }
  0x24   : > { %s1544_s9 = scalar_lea.vmem %s1543_s8, 16384  ;;  %p1545_p9 = scmp.lt.s32.totalorder %s1739_s12, %s1543_s8 }
  0x25   : > { %p1540_p5 = pnand %p1538_p2, %p1524_p3  ;;  %p1546_p4 = scmp.lt.s32.totalorder %s1544_s9, %s1537_s5 }
  0x27   : > { %p1541_p11 = pneg %p1540_p5  ;;  %p1547_p7 = por %p1546_p4, %p1545_p9 }
  0x29   : > { %p1548_p10 = pnand %p1547_p7, %p1541_p11 }
  0x2b   : > { %1551 = shalt.err (!%p1548_p10)
}
  0x2c   : > { %s1637_s11 = smov 256   ;;  %s1638_s21 = smov 16  }
  0x2d   : > { %1308 = dma.hbm_to_vmem [thread:$0]  (!%p1743_p0), %s1737_s10, 8192, %s1739_s12, %s1748_s14, %s1637_s11, %s1637_s11, %s1638_s21  }
  0x2e   : > { %p199_p12 = scmp.lt.s32.totalorder %s1634_s20, 3  ;;  %p2320_p1 = scmp.ge.s32.totalorder %s1634_s20, 1 }
  0x30   : > { %p200_p3 = pnand %p2320_p1, %p199_p12 }
  0x31   : > { %s1780_s22 = sand.u32 (!%p200_p3), 1, %s1618_s16  }
  0x32   : > { %203 = sbr.rel (%p200_p3) target bundleno = 446 (0x1be), region = 36  ;;  %s1212_s24 = sshll.u32 (!%p200_p3), %s1780_s22, 9 }
  0x33   : > { %s206_s25 = scalar_lea.sflag (!%p200_p3), [#allocation3], %s1780_s22  ;;  %s1784_s26 = scalar_lea.vmem (!%p200_p3), [#allocation2], %s1212_s24 }
  0x39   : > { %1605 = dma.done.wait (%p1715_p8), %s206_s25, 8192  }
  0x3a   : > { %1607 = vsyncadd (%p1715_p8), %s206_s25, 4294959104  ;;  %v1639_v0 = vmov 0   ;;  %v237_v1 = vld [vmem:[%s1784_s26 + $0x8] sm:$0xff]  ;;  %v239_v2 = vld [vmem:[%s1784_s26 + $0x18] sm:$0xff]  ;;  %s1213_s8 = sshll.u32 %s1780_s22, 7  ;;  %s1268_s11 = sshll.u32 %s1626_s18, 11 }
  0x3b   : > { %1369 = vset.pattern.permute.xlu1 %v1639_v0  ;;  %1368 = vset.pattern.permute.xlu0 %v1639_v0  ;;  %v236_v3 = vld [vmem:[%s1784_s26] sm:$0xff]  ;;  %v301_v4 = vpack.c.bf16 %v239_v2, %v237_v1  ;;  %v238_v5 = vld [vmem:[%s1784_s26 + $0x10] sm:$0xff]  ;;  %v241_v6 = vld [vmem:[%s1784_s26 + $0x28] sm:$0xff]  ;;  %s2172_s9 = scalar_lea.vmem [#allocation5], %s1213_s8  ;;  %s2256_s27 = scalar_lea.hbm %s2313_s4, %s1268_s11 }
  0x3c   : > { %v243_v7 = vld [vmem:[%s1784_s26 + $0x38] sm:$0xff]  ;;  %v300_v8 = vpack.c.bf16 %v238_v5, %v236_v3  ;;  %v240_v10 = vld [vmem:[%s1784_s26 + $0x20] sm:$0xff]  ;;  %v242_v11 = vld [vmem:[%s1784_s26 + $0x30] sm:$0xff]  ;;  %s1117_s21 = sshll.u32 %s2172_s9, 4  ;;  %s1102_s18 = scalar_lea.sflag [#allocation4], %s1780_s22  ;;  %s2258_s21 = int_to_ptr.vmem [resolvable:$true] %s1117_s21 }
  0x3d   : > { %v303_v9 = vpack.c.bf16 %v243_v7, %v241_v6  ;;  %v245_v12 = vld [vmem:[%s1784_s26 + $0x48] sm:$0xff]  ;;  %428 = vmatprep.subr.bf16.mxu0 %v301_v4  ;;  %1269 = vmatprep.subr.bf16.mxu1 %v301_v4  ;;  %v247_v13 = vld [vmem:[%s1784_s26 + $0x58] sm:$0xff]  ;;  %v302_v14 = vpack.c.bf16 %v242_v11, %v240_v10  ;;  %v244_v16 = vld [vmem:[%s1784_s26 + $0x40] sm:$0xff]  ;;  %s1552_s10 = scalar_lea.vmem %s2258_s21, 2048  ;;  %p2321_p9 = scmp.ne.s32.totalorder %s2317_s28, 0 }
  0x3e   : > { %429 = vmatpush1.bf16.msra.mxu0 %v300_v8  ;;  %1285 = vmatpush1.bf16.msra.mxu1 %v300_v8  ;;  %v305_v15 = vpack.c.bf16 %v247_v13, %v245_v12  ;;  %v246_v17 = vld [vmem:[%s1784_s26 + $0x50] sm:$0xff]  ;;  %v249_v18 = vld [vmem:[%s1784_s26 + $0x68] sm:$0xff]  ;;  %v251_v19 = vld [vmem:[%s1784_s26 + $0x78] sm:$0xff]  ;;  %p1553_p8 = scmp.ne.s32.totalorder %s2258_s21, %s1552_s10  ;;  %s1640_s12 = smov [#allocation5]  }
  0x3f   : > { %430 = vmatprep.subr.bf16.mxu0 %v303_v9  ;;  %1270 = vmatprep.subr.bf16.mxu1 %v303_v9  ;;  %v304_v20 = vpack.c.bf16 %v246_v17, %v244_v16  ;;  %v307_v21 = vpack.c.bf16 %v251_v19, %v249_v18  ;;  %v248_v22 = vld [vmem:[%s1784_s26 + $0x60] sm:$0xff]  ;;  %v250_v23 = vld [vmem:[%s1784_s26 + $0x70] sm:$0xff]  ;;  %v253_v24 = vld [vmem:[%s1784_s26 + $0x88] sm:$0xff]  ;;  %s1556_s13 = sshll.u32 %s1640_s12, 4  ;;  %s1557_s13 = int_to_ptr.vmem [resolvable:$false] %s1556_s13 }
  0x40   : > { %v255_v25 = vld [vmem:[%s1784_s26 + $0x98] sm:$0xff]  ;;  %v306_v26 = vpack.c.bf16 %v250_v23, %v248_v22  ;;  %v252_v28 = vld [vmem:[%s1784_s26 + $0x80] sm:$0xff]  ;;  %v254_v29 = vld [vmem:[%s1784_s26 + $0x90] sm:$0xff]  ;;  %p1554_p11 = pnand %p1553_p8, %p2321_p9  ;;  %s1558_s14 = scalar_lea.vmem %s1557_s13, 4096 }
  0x41   : > { %v309_v27 = vpack.c.bf16 %v255_v25, %v253_v24  ;;  %v257_v30 = vld [vmem:[%s1784_s26 + $0xa8] sm:$0xff]  ;;  %v259_v31 = vld [vmem:[%s1784_s26 + $0xb8] sm:$0xff]  ;;  %v308_v32 = vpack.c.bf16 %v254_v29, %v252_v28  ;;  %v256_v34 = vld [vmem:[%s1784_s26 + $0xa0] sm:$0xff]  ;;  %p1559_p6 = scmp.lt.s32.totalorder %s2258_s21, %s1557_s13  ;;  %p1560_p13 = scmp.lt.s32.totalorder %s1558_s14, %s1552_s10 }
  0x42   : > { %431 = vmatpush1.bf16.msra.mxu0 %v302_v14  ;;  %1286 = vmatpush1.bf16.msra.mxu1 %v302_v14  ;;  %v311_v33 = vpack.c.bf16 %v259_v31, %v257_v30  ;;  %v258_v35 = vld [vmem:[%s1784_s26 + $0xb0] sm:$0xff]  ;;  %v261_v36 = vld [vmem:[%s1784_s26 + $0xc8] sm:$0xff]  ;;  %v263_v37 = vld [vmem:[%s1784_s26 + $0xd8] sm:$0xff]  ;;  %p1555_p0 = pneg %p1554_p11 }
  0x43   : > { %432 = vmatprep.subr.bf16.mxu0 %v305_v15  ;;  %1271 = vmatprep.subr.bf16.mxu1 %v305_v15  ;;  %v543_v38 = vld [vmem:[%s2311_s2 + $0x10] sm:$0xff]  ;;  %v541_v39 = vld [vmem:[%s2311_s2] sm:$0xff]  ;;  %v310_v40 = vpack.c.bf16 %v258_v35, %v256_v34  ;;  %v313_v41 = vpack.c.bf16 %v263_v37, %v261_v36  ;;  %v265_v44 = vld [vmem:[%s1784_s26 + $0xe8] sm:$0xff]  ;;  %p1561_p2 = por %p1560_p13, %p1559_p6 }
  0x44   : > { %v260_v42 = vld [vmem:[%s1784_s26 + $0xc0] sm:$0xff]  ;;  %v262_v43 = vld [vmem:[%s1784_s26 + $0xd0] sm:$0xff]  ;;  %v267_v45 = vld [vmem:[%s1784_s26 + $0xf8] sm:$0xff]  ;;  %569 = vperm.xlu1 %1369, %v543_v38   ;;  %559 = vperm.xlu0 %1368, %v541_v39  }
  0x45   : > { %v544_v46 = vld [vmem:[%s2311_s2 + $0x18] sm:$0xff]  ;;  %v542_v47 = vld [vmem:[%s2311_s2 + $0x8] sm:$0xff]  ;;  %v312_v49 = vpack.c.bf16 %v262_v43, %v260_v42  ;;  %v264_v50 = vld [vmem:[%s1784_s26 + $0xe0] sm:$0xff]  ;;  %v315_v51 = vpack.c.bf16 %v267_v45, %v265_v44  ;;  %p1562_p5 = pnand %p1561_p2, %p1555_p0 }
  0x46   : > { %433 = vmatpush1.bf16.msra.mxu0 %v304_v20  ;;  %1287 = vmatpush1.bf16.msra.mxu1 %v304_v20  ;;  %v1372_v48 = vld [vmem:[%s2310_s1 + $0x4] ss:$8 sps:$4 sm:$0xff]   ;;  %v266_v52 = vld [vmem:[%s1784_s26 + $0xf0] sm:$0xff]  ;;  %v271_v55 = vld [vmem:[%s1784_s26 + $0x118] sm:$0xff] }
  0x47   : > { %434 = vmatprep.subr.bf16.mxu0 %v307_v21  ;;  %1272 = vmatprep.subr.bf16.mxu1 %v307_v21  ;;  %v269_v53 = vld [vmem:[%s1784_s26 + $0x108] sm:$0xff]  ;;  %v545_v57 = vld [vmem:[%s2311_s2 + $0x20] sm:$0xff]  ;;  %v314_v58 = vpack.c.bf16 %v266_v52, %v264_v50  ;;  %v270_v61 = vld [vmem:[%s1784_s26 + $0x110] sm:$0xff] }
  0x48   : > { %v1375_v54 = vld [vmem:[%s2310_s1 + $0x44] ss:$8 sps:$4 sm:$0xff]   ;;  %574 = vperm.xlu1 %1369, %v544_v46   ;;  %564 = vperm.xlu0 %1368, %v542_v47   ;;  %v317_v59 = vpack.c.bf16 %v271_v55, %v269_v53  ;;  %v275_v63 = vld [vmem:[%s1784_s26 + $0x138] sm:$0xff]  ;;  %v547_v1 = vld [vmem:[%s2311_s2 + $0x30] sm:$0xff] }
  0x49   : > { %v546_v56 = vld [vmem:[%s2311_s2 + $0x28] sm:$0xff]  ;;  %460 = vmatprep.mubr.bf16.mxu0 %v1372_v48  ;;  %500 = vmatprep.mubr.bf16.mxu1 %v1375_v54  ;;  %v268_v60 = vld [vmem:[%s1784_s26 + $0x100] sm:$0xff]  ;;  %v548_v0 = vld [vmem:[%s2311_s2 + $0x38] sm:$0xff] }
  0x4a   : > { %435 = vmatpush1.bf16.msra.mxu0 %v306_v26  ;;  %1288 = vmatpush1.bf16.msra.mxu1 %v306_v26  ;;  %v273_v62 = vld [vmem:[%s1784_s26 + $0x128] sm:$0xff]  ;;  %v316_v2 = vpack.c.bf16 %v270_v61, %v268_v60  ;;  %v272_v4 = vld [vmem:[%s1784_s26 + $0x120] sm:$0xff]  ;;  %v274_v5 = vld [vmem:[%s1784_s26 + $0x130] sm:$0xff] }
  0x4b   : > { %436 = vmatprep.subr.bf16.mxu0 %v309_v27  ;;  %1273 = vmatprep.subr.bf16.mxu1 %v309_v27  ;;  %v319_v3 = vpack.c.bf16 %v275_v63, %v273_v62  ;;  %v277_v6 = vld [vmem:[%s1784_s26 + $0x148] sm:$0xff]  ;;  %v279_v7 = vld [vmem:[%s1784_s26 + $0x158] sm:$0xff]  ;;  %v549_v9 = vld [vmem:[%s2311_s2 + $0x40] sm:$0xff]  ;;  %v318_v10 = vpack.c.bf16 %v274_v5, %v272_v4 }
  0x4c   : > { %584 = vperm.xlu1 %1369, %v546_v56   ;;  %579 = vperm.xlu0 %1368, %v545_v57   ;;  %v550_v8 = vld [vmem:[%s2311_s2 + $0x48] sm:$0xff]  ;;  %v321_v11 = vpack.c.bf16 %v279_v7, %v277_v6  ;;  %v276_v12 = vld [vmem:[%s1784_s26 + $0x140] sm:$0xff]  ;;  %v278_v13 = vld [vmem:[%s1784_s26 + $0x150] sm:$0xff] }
  0x4d   : > { %v281_v14 = vld [vmem:[%s1784_s26 + $0x168] sm:$0xff]  ;;  %v283_v15 = vld [vmem:[%s1784_s26 + $0x178] sm:$0xff]  ;;  %v551_v17 = vld [vmem:[%s2311_s2 + $0x50] sm:$0xff]  ;;  %v320_v18 = vpack.c.bf16 %v278_v13, %v276_v12 }
  0x4e   : > { %437 = vmatpush1.bf16.msra.mxu0 %v308_v32  ;;  %1289 = vmatpush1.bf16.msra.mxu1 %v308_v32  ;;  %v552_v16 = vld [vmem:[%s2311_s2 + $0x58] sm:$0xff]  ;;  %v323_v19 = vpack.c.bf16 %v283_v15, %v281_v14  ;;  %v280_v20 = vld [vmem:[%s1784_s26 + $0x160] sm:$0xff]  ;;  %v282_v21 = vld [vmem:[%s1784_s26 + $0x170] sm:$0xff] }
  0x4f   : > { %438 = vmatprep.subr.bf16.mxu0 %v311_v33  ;;  %1274 = vmatprep.subr.bf16.mxu1 %v311_v33  ;;  %v285_v22 = vld [vmem:[%s1784_s26 + $0x188] sm:$0xff]  ;;  %v287_v23 = vld [vmem:[%s1784_s26 + $0x198] sm:$0xff]  ;;  %v553_v25 = vld [vmem:[%s2311_s2 + $0x60] sm:$0xff]  ;;  %v322_v26 = vpack.c.bf16 %v282_v21, %v280_v20 }
  0x50   : > { %594 = vperm.xlu1 %1369, %v548_v0   ;;  %589 = vperm.xlu0 %1368, %v547_v1   ;;  %v554_v24 = vld [vmem:[%s2311_s2 + $0x68] sm:$0xff]  ;;  %v325_v27 = vpack.c.bf16 %v287_v23, %v285_v22  ;;  %v284_v28 = vld [vmem:[%s1784_s26 + $0x180] sm:$0xff]  ;;  %v286_v29 = vld [vmem:[%s1784_s26 + $0x190] sm:$0xff] }
  0x51   : > { %v289_v30 = vld [vmem:[%s1784_s26 + $0x1a8] sm:$0xff]  ;;  %v291_v31 = vld [vmem:[%s1784_s26 + $0x1b8] sm:$0xff]  ;;  %v555_v33 = vld [vmem:[%s2311_s2 + $0x70] sm:$0xff]  ;;  %v324_v34 = vpack.c.bf16 %v286_v29, %v284_v28 }
  0x52   : > { %439 = vmatpush1.bf16.msra.mxu0 %v310_v40  ;;  %1290 = vmatpush1.bf16.msra.mxu1 %v310_v40  ;;  %v556_v32 = vld [vmem:[%s2311_s2 + $0x78] sm:$0xff]  ;;  %v327_v35 = vpack.c.bf16 %v291_v31, %v289_v30  ;;  %v288_v36 = vld [vmem:[%s1784_s26 + $0x1a0] sm:$0xff]  ;;  %v290_v37 = vld [vmem:[%s1784_s26 + $0x1b0] sm:$0xff] }
  0x53   : > { %440 = vmatprep.subr.bf16.mxu0 %v313_v41  ;;  %1275 = vmatprep.subr.bf16.mxu1 %v313_v41  ;;  %v293_v38 = vld [vmem:[%s1784_s26 + $0x1c8] sm:$0xff]  ;;  %v295_v39 = vld [vmem:[%s1784_s26 + $0x1d8] sm:$0xff]  ;;  %v669_v41 = vld [vmem:[%s2312_s3] sm:$0xff]  ;;  %v326_v42 = vpack.c.bf16 %v290_v37, %v288_v36 }
  0x54   : > { %604 = vperm.xlu1 %1369, %v550_v8   ;;  %599 = vperm.xlu0 %1368, %v549_v9   ;;  %v670_v40 = vld [vmem:[%s2312_s3 + $0x8] sm:$0xff]  ;;  %v329_v43 = vpack.c.bf16 %v295_v39, %v293_v38  ;;  %v292_v44 = vld [vmem:[%s1784_s26 + $0x1c0] sm:$0xff]  ;;  %v294_v45 = vld [vmem:[%s1784_s26 + $0x1d0] sm:$0xff] }
  0x55   : > { %v297_v46 = vld [vmem:[%s1784_s26 + $0x1e8] sm:$0xff]  ;;  %v299_v47 = vld [vmem:[%s1784_s26 + $0x1f8] sm:$0xff]  ;;  %v328_v50 = vpack.c.bf16 %v294_v45, %v292_v44  ;;  %v296_v52 = vld [vmem:[%s1784_s26 + $0x1e0] sm:$0xff] }
  0x56   : > { %441 = vmatpush1.bf16.msra.mxu0 %v312_v49  ;;  %1291 = vmatpush1.bf16.msra.mxu1 %v312_v49  ;;  %v672_v48 = vld [vmem:[%s2312_s3 + $0x18] sm:$0xff]  ;;  %v671_v49 = vld [vmem:[%s2312_s3 + $0x10] sm:$0xff]  ;;  %v674_v54 = vld [vmem:[%s2312_s3 + $0x28] sm:$0xff] }
  0x57   : > { %442 = vmatprep.subr.bf16.mxu0 %v315_v51  ;;  %1276 = vmatprep.subr.bf16.mxu1 %v315_v51  ;;  %v331_v51 = vpack.c.bf16 %v299_v47, %v297_v46  ;;  %v298_v53 = vld [vmem:[%s1784_s26 + $0x1f0] sm:$0xff]  ;;  %v673_v55 = vld [vmem:[%s2312_s3 + $0x20] sm:$0xff]  ;;  %v678_v63 = vld [vmem:[%s2312_s3 + $0x48] sm:$0xff] }
  0x58   : > { %614 = vperm.xlu1 %1369, %v552_v16   ;;  %609 = vperm.xlu0 %1368, %v551_v17   ;;  %v330_v56 = vpack.c.bf16 %v298_v53, %v296_v52  ;;  %v1370_v57 = vld [vmem:[%s2310_s1] ss:$8 sps:$4 sm:$0xff]   ;;  %v675_v60 = vld [vmem:[%s2312_s3 + $0x30] sm:$0xff]  ;;  %v1382_v5 = vld [vmem:[%s2310_s1 + $0x24] ss:$8 sps:$4 sm:$0xff]  }
  0x59   : > { %v1376_v61 = vld [vmem:[%s2310_s1 + $0x14] ss:$8 sps:$4 sm:$0xff]   ;;  %v677_v0 = vld [vmem:[%s2312_s3 + $0x40] sm:$0xff]  ;;  %v1380_v1 = vld [vmem:[%s2310_s1 + $0x10] ss:$8 sps:$4 sm:$0xff]  }
  0x5a   : > { %443 = vmatpush1.bf16.msra.mxu0 %v314_v58  ;;  %1292 = vmatpush1.bf16.msra.mxu1 %v314_v58  ;;  %v1373_v58 = vld [vmem:[%s2310_s1 + $0x40] ss:$8 sps:$4 sm:$0xff]   ;;  %v1378_v62 = vld [vmem:[%s2310_s1 + $0x54] ss:$8 sps:$4 sm:$0xff]   ;;  %v1384_v6 = vld [vmem:[%s2310_s1 + $0x64] ss:$8 sps:$4 sm:$0xff]  }
  0x5b   : > { %444 = vmatprep.subr.bf16.mxu0 %v317_v59  ;;  %1277 = vmatprep.subr.bf16.mxu1 %v317_v59  ;;  %v676_v59 = vld [vmem:[%s2312_s3 + $0x38] sm:$0xff]  ;;  %v679_v4 = vld [vmem:[%s2312_s3 + $0x50] sm:$0xff]  ;;  %v682_v7 = vld [vmem:[%s2312_s3 + $0x68] sm:$0xff] }
  0x5c   : > { %624 = vperm.xlu1 %1369, %v554_v24   ;;  %619 = vperm.xlu0 %1368, %v553_v25   ;;  %v681_v8 = vld [vmem:[%s2312_s3 + $0x60] sm:$0xff]  ;;  %v683_v12 = vld [vmem:[%s2312_s3 + $0x70] sm:$0xff] }
  0x5d   : > { %v1386_v9 = vld [vmem:[%s2310_s1 + $0x20] ss:$8 sps:$4 sm:$0xff]   ;;  %v1388_v13 = vld [vmem:[%s2310_s1 + $0x34] ss:$8 sps:$4 sm:$0xff]   ;;  %v1392_v15 = vld [vmem:[%s2310_s1 + $0x30] ss:$8 sps:$4 sm:$0xff]  }
  0x5e   : > { %445 = vmatpush1.bf16.msra.mxu0 %v316_v2  ;;  %1293 = vmatpush1.bf16.msra.mxu1 %v316_v2  ;;  %v1381_v2 = vld [vmem:[%s2310_s1 + $0x50] ss:$8 sps:$4 sm:$0xff]   ;;  %v1390_v14 = vld [vmem:[%s2310_s1 + $0x74] ss:$8 sps:$4 sm:$0xff]  }
  0x5f   : > { %446 = vmatprep.subr.bf16.mxu0 %v319_v3  ;;  %1278 = vmatprep.subr.bf16.mxu1 %v319_v3  ;;  %v680_v3 = vld [vmem:[%s2312_s3 + $0x58] sm:$0xff] }
  0x60   : > { %634 = vperm.xlu1 %1369, %v556_v32   ;;  %629 = vperm.xlu0 %1368, %v555_v33   ;;  %v1393_v16 = vld [vmem:[%s2310_s1 + $0x70] ss:$8 sps:$4 sm:$0xff]  }
  0x62   : > { %447 = vmatpush1.bf16.msra.mxu0 %v318_v10  ;;  %1294 = vmatpush1.bf16.msra.mxu1 %v318_v10  ;;  %v1387_v10 = vld [vmem:[%s2310_s1 + $0x60] ss:$8 sps:$4 sm:$0xff]  }
  0x63   : > { %448 = vmatprep.subr.bf16.mxu0 %v321_v11  ;;  %1279 = vmatprep.subr.bf16.mxu1 %v321_v11  ;;  %v684_v11 = vld [vmem:[%s2312_s3 + $0x78] sm:$0xff] }
  0x64   : > { %692 = vperm.xlu1 %1369, %v670_v40   ;;  %687 = vperm.xlu0 %1368, %v669_v41  }
  0x66   : > { %449 = vmatpush1.bf16.msra.mxu0 %v320_v18  ;;  %1295 = vmatpush1.bf16.msra.mxu1 %v320_v18 }
  0x67   : > { %450 = vmatprep.subr.bf16.mxu0 %v323_v19  ;;  %1280 = vmatprep.subr.bf16.mxu1 %v323_v19 }
  0x68   : > { %702 = vperm.xlu1 %1369, %v672_v48   ;;  %697 = vperm.xlu0 %1368, %v671_v49  }
  0x6a   : > { %451 = vmatpush1.bf16.msra.mxu0 %v322_v26  ;;  %1296 = vmatpush1.bf16.msra.mxu1 %v322_v26 }
  0x6b   : > { %452 = vmatprep.subr.bf16.mxu0 %v325_v27  ;;  %1281 = vmatprep.subr.bf16.mxu1 %v325_v27 }
  0x6c   : > { %712 = vperm.xlu1 %1369, %v674_v54   ;;  %707 = vperm.xlu0 %1368, %v673_v55  }
  0x6e   : > { %453 = vmatpush1.bf16.msra.mxu0 %v324_v34  ;;  %1297 = vmatpush1.bf16.msra.mxu1 %v324_v34 }
  0x6f   : > { %454 = vmatprep.subr.bf16.mxu0 %v327_v35  ;;  %1282 = vmatprep.subr.bf16.mxu1 %v327_v35 }
  0x70   : > { %722 = vperm.xlu1 %1369, %v676_v59   ;;  %717 = vperm.xlu0 %1368, %v675_v60  }
  0x72   : > { %455 = vmatpush1.bf16.msra.mxu0 %v326_v42  ;;  %1298 = vmatpush1.bf16.msra.mxu1 %v326_v42 }
  0x73   : > { %456 = vmatprep.subr.bf16.mxu0 %v329_v43  ;;  %1283 = vmatprep.subr.bf16.mxu1 %v329_v43 }
  0x74   : > { %732 = vperm.xlu1 %1369, %v678_v63   ;;  %727 = vperm.xlu0 %1368, %v677_v0  }
  0x76   : > { %457 = vmatpush1.bf16.msra.mxu0 %v328_v50  ;;  %1299 = vmatpush1.bf16.msra.mxu1 %v328_v50 }
  0x77   : > { %458 = vmatprep.subr.bf16.mxu0 %v331_v51  ;;  %1284 = vmatprep.subr.bf16.mxu1 %v331_v51 }
  0x78   : > { %742 = vperm.xlu1 %1369, %v680_v3   ;;  %737 = vperm.xlu0 %1368, %v679_v4  }
  0x7a   : > { %459 = vmatpush1.bf16.msra.mxu0 %v330_v56  ;;  %1300 = vmatpush1.bf16.msra.mxu1 %v330_v56 }
  0x7c   : > { %752 = vperm.xlu1 %1369, %v682_v7   ;;  %747 = vperm.xlu0 %1368, %v681_v8  }
  0x7d   : > { %461 = vmatmul.mubr.bf16.vlgmr.msra.gmra.mrb[0].mxu0 %v1370_v57  ;;  %501 = vmatmul.mubr.bf16.vlgmr.msra.gmra.mrb[0].mxu1 %v1373_v58 }
  0x7e   : > { %470 = vmatprep.mubr.bf16.mxu0 %v1376_v61  ;;  %510 = vmatprep.mubr.bf16.mxu1 %v1378_v62 }
  0x80   : > { %762 = vperm.xlu1 %1369, %v684_v11   ;;  %757 = vperm.xlu0 %1368, %v683_v12  }
  0x85   : > { %471 = vmatmul.mubr.bf16.gmra.mrb[4].mxu0 %v1380_v1  ;;  %511 = vmatmul.mubr.bf16.gmra.mrb[4].mxu1 %v1381_v2 }
  0x86   : > { %480 = vmatprep.mubr.bf16.mxu0 %v1382_v5  ;;  %520 = vmatprep.mubr.bf16.mxu1 %v1384_v6 }
  0x8d   : > { %481 = vmatmul.mubr.bf16.gmra.mrb[8].mxu0 %v1386_v9  ;;  %521 = vmatmul.mubr.bf16.gmra.mrb[8].mxu1 %v1387_v10 }
  0x8e   : > { %490 = vmatprep.mubr.bf16.mxu0 %v1388_v13  ;;  %530 = vmatprep.mubr.bf16.mxu1 %v1390_v14 }
  0x95   : > { %491 = vmatmul.mubr.bf16.gmra.mrb[12].mxu0 %v1392_v15  ;;  %531 = vmatmul.mubr.bf16.gmra.mrb[12].mxu1 %v1393_v16 }
  0xc3   : > { %v560_v17 = vpop.permute.xlu0 %559  ;;  %v1998_v18 = vpop.permute.xlu1 %569 }
  0xc7   : > { %v565_v19 = vpop.permute.xlu0 %564  ;;  %v2000_v20 = vpop.permute.xlu1 %574 }
  0xcb   : > { %v2002_v21 = vpop.permute.xlu0 %579  ;;  %v2004_v22 = vpop.permute.xlu1 %584 }
  0xcf   : > { %v2006_v23 = vpop.permute.xlu0 %589  ;;  %v2008_v24 = vpop.permute.xlu1 %594 }
  0xd3   : > { %v600_v25 = vpop.permute.xlu0 %599  ;;  %v605_v26 = vpop.permute.xlu1 %604 }
  0xd7   : > { %v2010_v27 = vpop.permute.xlu0 %609  ;;  %v2012_v28 = vpop.permute.xlu1 %614 }
  0xdb   : > { %v2014_v29 = vpop.permute.xlu0 %619  ;;  %v2016_v30 = vpop.permute.xlu1 %624 }
  0xdf   : > { %v2018_v31 = vpop.permute.xlu0 %629  ;;  %v2020_v32 = vpop.permute.xlu1 %634 }
  0xe3   : > { %v688_v33 = vpop.permute.xlu0 %687  ;;  %v693_v34 = vpop.permute.xlu1 %692 }
  0xe7   : > { %v2022_v35 = vpop.permute.xlu0 %697  ;;  %v2024_v36 = vpop.permute.xlu1 %702 }
  0xeb   : > { %v2026_v37 = vpop.permute.xlu0 %707  ;;  %v2028_v38 = vpop.permute.xlu1 %712 }
  0xef   : > { %v2030_v39 = vpop.permute.xlu0 %717  ;;  %v2032_v40 = vpop.permute.xlu1 %722 }
  0xf3   : > { %v728_v41 = vpop.permute.xlu0 %727  ;;  %v733_v58 = vpop.permute.xlu1 %732 }
  0xf7   : > { %v738_v11 = vpop.permute.xlu0 %737 }
 0x150   : > { %v462_v42 = vpop.f32.mrb[0].mxu0  ;;  %v502_v43 = vpop.f32.mrb[0].mxu1 }
 0x151   : > { %v637_v44 = vmul.f32 %v560_v17, %v462_v42  ;;  %v653_v45 = vmul.f32 %v600_v25, %v502_v43  ;;  %v464_v46 = vpop.f32.mrb[1].mxu0  ;;  %v504_v47 = vpop.f32.mrb[1].mxu1 }
 0x152   : > { %v638_v48 = vmul.f32 %v560_v17, %v464_v46  ;;  %v654_v49 = vmul.f32 %v600_v25, %v504_v47  ;;  %v466_v50 = vpop.f32.mrb[2].mxu0  ;;  %v506_v51 = vpop.f32.mrb[2].mxu1 }
 0x153   : > { %v2034_v52 = vadd.f32 %v688_v33, %v637_v44  ;;  %v2036_v53 = vadd.f32 %v728_v41, %v653_v45  ;;  %v639_v54 = vmul.f32 %v565_v19, %v466_v50  ;;  %v655_v55 = vmul.f32 %v605_v26, %v506_v51  ;;  %v468_v56 = vpop.f32.mrb[3].mxu0  ;;  %v508_v57 = vpop.f32.mrb[3].mxu1 }
 0x154   : > { %v2038_v59 = vadd.f32 %v688_v33, %v638_v48  ;;  %v2040_v60 = vadd.f32 %v728_v41, %v654_v49  ;;  %v640_v61 = vmul.f32 %v565_v19, %v468_v56  ;;  %v656_v62 = vmul.f32 %v605_v26, %v508_v57 }
 0x155   : > { %v797_v63 = vsub.f32 0.0, %v2034_v52  ;;  %v813_v0 = vsub.f32 0.0, %v2036_v53  ;;  %v2044_v1 = vadd.f32 %v693_v34, %v639_v54  ;;  %v2046_v2 = vadd.f32 %v733_v58, %v655_v55  ;;  %v743_v55 = vpop.permute.xlu1 %742 }
 0x156   : > { %v798_v3 = vsub.f32 0.0, %v2038_v59  ;;  %v814_v4 = vsub.f32 0.0, %v2040_v60  ;;  %v2050_v5 = vadd.f32 %v693_v34, %v640_v61  ;;  %v2052_v6 = vadd.f32 %v733_v58, %v656_v62 }
 0x157   : > { %v829_v7 = vmul.f32 1.442695, %v797_v63  ;;  %v861_v8 = vmul.f32 1.442695, %v813_v0  ;;  %v799_v9 = vsub.f32 0.0, %v2044_v1  ;;  %v815_v10 = vsub.f32 0.0, %v2046_v2 }
 0x158   : > { %v831_v12 = vmul.f32 1.442695, %v798_v3  ;;  %v863_v13 = vmul.f32 1.442695, %v814_v4  ;;  %v800_v14 = vsub.f32 0.0, %v2050_v5  ;;  %v816_v15 = vsub.f32 0.0, %v2052_v6 }
 0x159   : > { %1394 = vpow2.f32 %v829_v7  ;;  %v833_v16 = vmul.f32 1.442695, %v799_v9  ;;  %v865_v17 = vmul.f32 1.442695, %v815_v10  ;;  %v472_v19 = vpop.f32.mrb[4].mxu0  ;;  %v512_v25 = vpop.f32.mrb[4].mxu1 }
 0x15a   : > { %1396 = vpow2.f32 %v861_v8  ;;  %v835_v26 = vmul.f32 1.442695, %v800_v14  ;;  %v867_v33 = vmul.f32 1.442695, %v816_v15  ;;  %v641_v34 = vmul.f32 %v1998_v18, %v472_v19  ;;  %v474_v41 = vpop.f32.mrb[5].mxu0  ;;  %v514_v42 = vpop.f32.mrb[5].mxu1 }
 0x15b   : > { %1398 = vpow2.f32 %v831_v12  ;;  %v657_v43 = vmul.f32 %v2010_v27, %v512_v25  ;;  %v642_v44 = vmul.f32 %v1998_v18, %v474_v41  ;;  %v658_v45 = vmul.f32 %v2010_v27, %v514_v42  ;;  %v476_v46 = vpop.f32.mrb[6].mxu0  ;;  %v516_v47 = vpop.f32.mrb[6].mxu1 }
 0x15c   : > { %1400 = vpow2.f32 %v863_v13  ;;  %v2063_v48 = vadd.f32 %v2022_v35, %v641_v34  ;;  %v643_v49 = vmul.f32 %v2000_v20, %v476_v46  ;;  %v659_v50 = vmul.f32 %v2012_v28, %v516_v47  ;;  %v478_v51 = vpop.f32.mrb[7].mxu0  ;;  %v518_v54 = vpop.f32.mrb[7].mxu1 }
 0x15d   : > { %1402 = vpow2.f32 %v833_v16  ;;  %v2067_v56 = vadd.f32 %v738_v11, %v657_v43  ;;  %v2070_v18 = vadd.f32 %v2022_v35, %v642_v44  ;;  %v2072_v27 = vadd.f32 %v738_v11, %v658_v45  ;;  %v748_v45 = vpop.permute.xlu0 %747 }
 0x15e   : > { %1404 = vpow2.f32 %v865_v17  ;;  %v801_v57 = vsub.f32 0.0, %v2063_v48  ;;  %v2076_v58 = vadd.f32 %v2024_v36, %v643_v49  ;;  %v2078_v61 = vadd.f32 %v743_v55, %v659_v50 }
 0x15f   : > { %1406 = vpow2.f32 %v835_v26  ;;  %v817_v62 = vsub.f32 0.0, %v2067_v56  ;;  %v802_v63 = vsub.f32 0.0, %v2070_v18  ;;  %v818_v0 = vsub.f32 0.0, %v2072_v27 }
 0x160   : > { %1408 = vpow2.f32 %v867_v33  ;;  %v837_v35 = vmul.f32 1.442695, %v801_v57  ;;  %v482_v3 = vpop.f32.mrb[8].mxu0  ;;  %v522_v4 = vpop.f32.mrb[8].mxu1  ;;  %v644_v10 = vmul.f32 %v2000_v20, %v478_v51  ;;  %v803_v11 = vsub.f32 0.0, %v2076_v58 }
 0x161   : > { %v869_v7 = vmul.f32 1.442695, %v817_v62  ;;  %v839_v8 = vmul.f32 1.442695, %v802_v63  ;;  %v871_v9 = vmul.f32 1.442695, %v818_v0  ;;  %v660_v13 = vmul.f32 %v2012_v28, %v518_v54 }
 0x162   : > { %1410 = vpow2.f32 %v837_v35  ;;  %v819_v12 = vsub.f32 0.0, %v2078_v61  ;;  %v484_v14 = vpop.f32.mrb[9].mxu0  ;;  %v524_v15 = vpop.f32.mrb[9].mxu1  ;;  %v2088_v17 = vadd.f32 %v2024_v36, %v644_v10  ;;  %v645_v19 = vmul.f32 %v2002_v21, %v482_v3 }
 0x163   : > { %v1395_v16 = vpop.eup %1394  ;;  %1412 = vpow2.f32 %v869_v7  ;;  %v661_v25 = vmul.f32 %v2014_v29, %v522_v4  ;;  %v486_v26 = vpop.f32.mrb[10].mxu0  ;;  %v2092_v41 = vadd.f32 %v743_v55, %v660_v13  ;;  %v646_v28 = vmul.f32 %v2002_v21, %v484_v14 }
 0x164   : > { %v526_v20 = vpop.f32.mrb[10].mxu1  ;;  %v1397_v33 = vpop.eup %1396  ;;  %v893_v34 = vadd.f32 1.0, %v1395_v16  ;;  %1414 = vpow2.f32 %v839_v8  ;;  %v804_v46 = vsub.f32 0.0, %v2088_v17  ;;  %v2099_v47 = vadd.f32 %v2026_v37, %v645_v19 }
 0x165   : > { %v488_v42 = vpop.f32.mrb[11].mxu0  ;;  %v2095_v43 = vpop.f32.mrb[11].mxu1  ;;  %v909_v36 = vadd.f32 1.0, %v1397_v33  ;;  %1416 = vpow2.f32 %v871_v9  ;;  %v820_v51 = vsub.f32 0.0, %v2092_v41  ;;  %v2102_v54 = vadd.f32 %v748_v45, %v661_v25 }
 0x166   : > { %v1399_v44 = vpop.eup %1398  ;;  %1418 = vrcp.f32 %v893_v34  ;;  %v841_v57 = vmul.f32 1.442695, %v803_v11  ;;  %v2104_v62 = vmul.f32 1.442695, %v819_v12  ;;  %v2106_v35 = vmul.f32 1.442695, %v804_v46 }
 0x167   : > { %v1401_v49 = vpop.eup %1400  ;;  %v894_v50 = vadd.f32 1.0, %v1399_v44  ;;  %1420 = vrcp.f32 %v909_v36  ;;  %v805_v3 = vsub.f32 0.0, %v2099_v47  ;;  %v2113_v10 = vmul.f32 1.442695, %v820_v51 }
 0x168   : > { %v1403_v21 = vpop.eup %1402  ;;  %v910_v55 = vadd.f32 1.0, %v1401_v49  ;;  %v2109_v4 = vpop.f32.mrb[12].mxu0  ;;  %v2116_v11 = vadd.f32 %v2026_v37, %v646_v28  ;;  %v821_v19 = vsub.f32 0.0, %v2102_v54  ;;  %v662_v25 = vmul.f32 %v2014_v29, %v524_v15 }
 0x169   : > { %v1405_v63 = vpop.eup %1404  ;;  %1422 = vrcp.f32 %v894_v50  ;;  %v895_v0 = vadd.f32 1.0, %v1403_v21  ;;  %v2111_v7 = vpop.f32.mrb[12].mxu1  ;;  %v647_v28 = vmul.f32 %v2004_v22, %v486_v26  ;;  %v663_v29 = vmul.f32 %v2016_v30, %v526_v20 }
 0x16a   : > { %v1407_v8 = vpop.eup %1406  ;;  %1424 = vrcp.f32 %v910_v55  ;;  %v911_v9 = vadd.f32 1.0, %v1405_v63  ;;  %v2118_v12 = vpop.f32.mrb[13].mxu0  ;;  %v806_v37 = vsub.f32 0.0, %v2116_v11  ;;  %v2134_v50 = vadd.f32 %v748_v45, %v662_v25 }
 0x16b   : > { %v2120_v13 = vpop.f32.mrb[13].mxu1  ;;  %v1409_v14 = vpop.eup %1408  ;;  %1426 = vrcp.f32 %v895_v0  ;;  %v896_v16 = vadd.f32 1.0, %v1407_v8  ;;  %v648_v15 = vmul.f32 %v2004_v22, %v488_v42  ;;  %v845_v63 = vmul.f32 1.442695, %v805_v3 }
 0x16c   : > { %v2124_v33 = vpop.f32.mrb[14].mxu0  ;;  %v2126_v34 = vpop.f32.mrb[14].mxu1  ;;  %1428 = vrcp.f32 %v911_v9  ;;  %v912_v44 = vadd.f32 1.0, %v1409_v14  ;;  %v2139_v0 = vadd.f32 %v2028_v38, %v647_v28  ;;  %v822_v9 = vsub.f32 0.0, %v2134_v50 }
 0x16d   : > { %v2130_v36 = vpop.f32.mrb[15].mxu0  ;;  %v2132_v46 = vpop.f32.mrb[15].mxu1  ;;  %1430 = vrcp.f32 %v896_v16  ;;  %v2146_v42 = vadd.f32 %v2028_v38, %v648_v15  ;;  %v877_v25 = vmul.f32 1.442695, %v821_v19  ;;  %v664_v38 = vmul.f32 %v2016_v30, %v2095_v43 }
 0x16e   : > { %v1411_v49 = vpop.eup %1410  ;;  %v753_v21 = vpop.permute.xlu1 %752  ;;  %1432 = vrcp.f32 %v912_v44  ;;  %v807_v22 = vsub.f32 0.0, %v2139_v0  ;;  %v847_v44 = vmul.f32 1.442695, %v806_v37  ;;  %v649_v37 = vmul.f32 %v2006_v23, %v2109_v4 }
 0x16f   : > { %v1413_v51 = vpop.eup %1412  ;;  %v897_v55 = vadd.f32 1.0, %v1411_v49  ;;  %1434 = vpow2.f32 %v841_v57  ;;  %v2142_v45 = vadd.f32 %v753_v21, %v663_v29  ;;  %v879_v49 = vmul.f32 1.442695, %v822_v9 }
 0x170   : > { %v1415_v26 = vpop.eup %1414  ;;  %v913_v8 = vadd.f32 1.0, %v1413_v51  ;;  %v665_v30 = vmul.f32 %v2018_v31, %v2111_v7 }
 0x171   : > { %v1417_v14 = vpop.eup %1416  ;;  %1436 = vrcp.f32 %v897_v55  ;;  %v898_v20 = vadd.f32 1.0, %v1415_v26  ;;  %v823_v29 = vsub.f32 0.0, %v2142_v45  ;;  %v849_v26 = vmul.f32 1.442695, %v807_v22  ;;  %v758_v22 = vpop.permute.xlu0 %757 }
 0x172   : > { %v1419_v3 = vpop.eup %1418  ;;  %1438 = vrcp.f32 %v913_v8  ;;  %v914_v16 = vadd.f32 1.0, %v1417_v14 }
 0x173   : > { %v1421_v28 = vpop.eup %1420  ;;  %v957_v57 = vmul.f32 %v1419_v3, %v2034_v52  ;;  %1440 = vrcp.f32 %v898_v20  ;;  %v808_v52 = vsub.f32 0.0, %v2146_v42 }
 0x174   : > { %v1423_v51 = vpop.eup %1422  ;;  %v973_v55 = vmul.f32 %v1421_v28, %v2036_v53  ;;  %1442 = vrcp.f32 %v914_v16  ;;  %v2161_v53 = vadd.f32 %v753_v21, %v664_v38 }
 0x175   : > { %v1425_v15 = vpop.eup %1424  ;;  %v958_v19 = vmul.f32 %v1423_v51, %v2038_v59  ;;  %1444 = vpow2.f32 %v2104_v62  ;;  %v2168_v62 = vadd.f32 %v2030_v39, %v649_v37  ;;  %v851_v3 = vmul.f32 1.442695, %v808_v52 }
 0x176   : > { %v1427_v8 = vpop.eup %1426  ;;  %v974_v9 = vmul.f32 %v1425_v15, %v2040_v60  ;;  %1446 = vpow2.f32 %v2106_v35  ;;  %v824_v35 = vsub.f32 0.0, %v2161_v53  ;;  %v2179_v51 = vadd.f32 %v758_v22, %v665_v30 }
 0x177   : > { %v1429_v43 = vpop.eup %1428  ;;  %v1252_v14 = vpack.c.bf16 %v958_v19, %v957_v57  ;;  %v959_v59 = vmul.f32 %v1427_v8, %v2044_v1  ;;  %1448 = vpow2.f32 %v2113_v10  ;;  %v809_v7 = vsub.f32 0.0, %v2168_v62 }
 0x178   : > { %v1431_v4 = vpop.eup %1430  ;;  %v1260_v20 = vpack.c.bf16 %v974_v9, %v973_v55  ;;  %v975_v60 = vmul.f32 %v1429_v43, %v2046_v2  ;;  %1450 = vpow2.f32 %v845_v63  ;;  %v881_v63 = vmul.f32 1.442695, %v823_v29 }
 0x179   : > { %v1433_v21 = vpop.eup %1432  ;;  %1085 = vst [vmem:[%s2172_s9] sm:$0xff] %v1252_v14  ;;  %v960_v1 = vmul.f32 %v1431_v4, %v2050_v5  ;;  %1452 = vpow2.f32 %v877_v25  ;;  %v883_v38 = vmul.f32 1.442695, %v824_v35  ;;  %v666_v9 = vmul.f32 %v2018_v31, %v2120_v13 }
 0x17a   : > { %v1435_v10 = vpop.eup %1434  ;;  %1093 = vst [vmem:[%s2172_s9 + $0x40] sm:$0xff] %v1260_v20  ;;  %v976_v2 = vmul.f32 %v1433_v21, %v2052_v6  ;;  %1454 = vpow2.f32 %v847_v44  ;;  %v853_v44 = vmul.f32 1.442695, %v809_v7  ;;  %v667_v31 = vmul.f32 %v2020_v32, %v2126_v34  ;;  %v763_v21 = vpop.permute.xlu1 %762 }
 0x17b   : > { %v1437_v16 = vpop.eup %1436  ;;  %v1253_v28 = vpack.c.bf16 %v960_v1, %v959_v59  ;;  %v899_v57 = vadd.f32 1.0, %v1435_v10  ;;  %1456 = vpow2.f32 %v879_v49  ;;  %v650_v49 = vmul.f32 %v2006_v23, %v2118_v12 }
 0x17c   : > { %v1439_v5 = vpop.eup %1438  ;;  %v1261_v25 = vpack.c.bf16 %v976_v2, %v975_v60  ;;  %v961_v55 = vmul.f32 %v1437_v16, %v2063_v48  ;;  %1458 = vpow2.f32 %v849_v26  ;;  %v825_v26 = vsub.f32 0.0, %v2179_v51 }
 0x17d   : > { %v1441_v15 = vpop.eup %1440  ;;  %1086 = vst [vmem:[%s2172_s9 + $0x8] sm:$0xff] %v1253_v28  ;;  %v977_v6 = vmul.f32 %v1439_v5, %v2067_v56  ;;  %1460 = vrcp.f32 %v899_v57  ;;  %v651_v23 = vmul.f32 %v2008_v24, %v2124_v33  ;;  %v2196_v14 = vadd.f32 %v2030_v39, %v650_v49 }
 0x17e   : > { %v1443_v29 = vpop.eup %1442  ;;  %1094 = vst [vmem:[%s2172_s9 + $0x48] sm:$0xff] %v1261_v25  ;;  %v962_v19 = vmul.f32 %v1441_v15, %v2070_v18  ;;  %1462 = vpow2.f32 %v881_v63  ;;  %v652_v13 = vmul.f32 %v2008_v24, %v2130_v36  ;;  %v2203_v60 = vadd.f32 %v758_v22, %v666_v9 }
 0x17f   : > { %v1445_v52 = vpop.eup %1444  ;;  %v978_v48 = vmul.f32 %v1443_v29, %v2072_v27  ;;  %1464 = vpow2.f32 %v851_v3  ;;  %v885_v1 = vmul.f32 1.442695, %v825_v26  ;;  %v2206_v7 = vadd.f32 %v2032_v40, %v651_v23 }
 0x180   : > { %v1447_v37 = vpop.eup %1446  ;;  %v1254_v56 = vpack.c.bf16 %v962_v19, %v961_v55  ;;  %v915_v8 = vadd.f32 1.0, %v1445_v52  ;;  %1466 = vpow2.f32 %v883_v38  ;;  %v2208_v34 = vadd.f32 %v763_v21, %v667_v31 }
 0x181   : > { %v1449_v18 = vpop.eup %1448  ;;  %v1262_v30 = vpack.c.bf16 %v978_v48, %v977_v6  ;;  %v900_v43 = vadd.f32 1.0, %v1447_v37  ;;  %1468 = vpow2.f32 %v853_v44  ;;  %v668_v24 = vmul.f32 %v2020_v32, %v2132_v46 }
 0x182   : > { %v1451_v12 = vpop.eup %1450  ;;  %1087 = vst [vmem:[%s2172_s9 + $0x10] sm:$0xff] %v1254_v56  ;;  %1470 = vrcp.f32 %v915_v8  ;;  %v916_v27 = vadd.f32 1.0, %v1449_v18  ;;  %v810_v63 = vsub.f32 0.0, %v2196_v14  ;;  %v2214_v3 = vadd.f32 %v2032_v40, %v652_v13 }
 0x183   : > { %v1453_v59 = vpop.eup %1452  ;;  %1095 = vst [vmem:[%s2172_s9 + $0x50] sm:$0xff] %v1262_v30  ;;  %1472 = vrcp.f32 %v900_v43  ;;  %v901_v4 = vadd.f32 1.0, %v1451_v12  ;;  %v826_v28 = vsub.f32 0.0, %v2203_v60  ;;  %v2217_v57 = vadd.f32 %v763_v21, %v668_v24 }
 0x184   : > { %v1455_v20 = vpop.eup %1454  ;;  %1474 = vrcp.f32 %v916_v27  ;;  %v917_v33 = vadd.f32 1.0, %v1453_v59  ;;  %v811_v55 = vsub.f32 0.0, %v2206_v7  ;;  %v827_v38 = vsub.f32 0.0, %v2208_v34 }
 0x185   : > { %v1457_v35 = vpop.eup %1456  ;;  %1476 = vrcp.f32 %v901_v4  ;;  %v902_v39 = vadd.f32 1.0, %v1455_v20  ;;  %v855_v6 = vmul.f32 1.442695, %v810_v63  ;;  %v812_v44 = vsub.f32 0.0, %v2214_v3 }
 0x186   : > { %v1459_v10 = vpop.eup %1458  ;;  %1478 = vrcp.f32 %v917_v33  ;;  %v918_v2 = vadd.f32 1.0, %v1457_v35  ;;  %v887_v49 = vmul.f32 1.442695, %v826_v28  ;;  %v828_v52 = vsub.f32 0.0, %v2217_v57 }
 0x187   : > { %v1461_v36 = vpop.eup %1460  ;;  %1480 = vrcp.f32 %v902_v39  ;;  %v903_v22 = vadd.f32 1.0, %v1459_v10  ;;  %v857_v37 = vmul.f32 1.442695, %v811_v55  ;;  %v889_v9 = vmul.f32 1.442695, %v827_v38 }
 0x188   : > { %v1463_v16 = vpop.eup %1462  ;;  %1482 = vrcp.f32 %v918_v2  ;;  %v963_v19 = vmul.f32 %v1461_v36, %v2076_v58  ;;  %v859_v58 = vmul.f32 1.442695, %v812_v44  ;;  %v891_v27 = vmul.f32 1.442695, %v828_v52 }
 0x189   : > { %v1465_v5 = vpop.eup %1464  ;;  %1484 = vrcp.f32 %v903_v22  ;;  %v919_v25 = vadd.f32 1.0, %v1463_v16 }
 0x18a   : > { %v1467_v32 = vpop.eup %1466  ;;  %v904_v46 = vadd.f32 1.0, %v1465_v5  ;;  %1486 = vpow2.f32 %v885_v1 }
 0x18b   : > { %v1469_v15 = vpop.eup %1468  ;;  %1488 = vrcp.f32 %v919_v25  ;;  %v920_v40 = vadd.f32 1.0, %v1467_v32 }
 0x18c   : > { %v1471_v29 = vpop.eup %1470  ;;  %1490 = vrcp.f32 %v904_v46  ;;  %v905_v33 = vadd.f32 1.0, %v1469_v15 }
 0x18d   : > { %v1473_v48 = vpop.eup %1472  ;;  %v979_v26 = vmul.f32 %v1471_v29, %v2078_v61  ;;  %1492 = vrcp.f32 %v920_v40 }
 0x18e   : > { %v1475_v56 = vpop.eup %1474  ;;  %v964_v8 = vmul.f32 %v1473_v48, %v2088_v17  ;;  %1494 = vpow2.f32 %v855_v6 }
 0x18f   : > { %v1477_v18 = vpop.eup %1476  ;;  %v980_v30 = vmul.f32 %v1475_v56, %v2092_v41  ;;  %1496 = vpow2.f32 %v887_v49 }
 0x190   : > { %v1479_v43 = vpop.eup %1478  ;;  %v1255_v23 = vpack.c.bf16 %v964_v8, %v963_v19  ;;  %v965_v12 = vmul.f32 %v1477_v18, %v2099_v47  ;;  %1498 = vpow2.f32 %v857_v37 }
 0x191   : > { %v1481_v61 = vpop.eup %1480  ;;  %v1263_v59 = vpack.c.bf16 %v980_v30, %v979_v26  ;;  %v981_v4 = vmul.f32 %v1479_v43, %v2102_v54  ;;  %1500 = vpow2.f32 %v889_v9 }
 0x192   : > { %v1483_v17 = vpop.eup %1482  ;;  %1088 = vst [vmem:[%s2172_s9 + $0x18] sm:$0xff] %v1255_v23  ;;  %v966_v31 = vmul.f32 %v1481_v61, %v2116_v11  ;;  %1502 = vpow2.f32 %v859_v58 }
 0x193   : > { %v1485_v41 = vpop.eup %1484  ;;  %1096 = vst [vmem:[%s2172_s9 + $0x58] sm:$0xff] %v1263_v59  ;;  %v982_v13 = vmul.f32 %v1483_v17, %v2134_v50  ;;  %1504 = vpow2.f32 %v891_v27 }
 0x194   : > { %v1487_v47 = vpop.eup %1486  ;;  %v1256_v20 = vpack.c.bf16 %v966_v31, %v965_v12  ;;  %v967_v54 = vmul.f32 %v1485_v41, %v2139_v0  ;;  %1506 = vrcp.f32 %v905_v33 }
 0x195   : > { %v1489_v35 = vpop.eup %1488  ;;  %v1264_v21 = vpack.c.bf16 %v982_v13, %v981_v4  ;;  %v921_v39 = vadd.f32 1.0, %v1487_v47 }
 0x196   : > { %v1491_v1 = vpop.eup %1490  ;;  %1089 = vst [vmem:[%s2172_s9 + $0x20] sm:$0xff] %v1256_v20  ;;  %v983_v11 = vmul.f32 %v1489_v35, %v2142_v45 }
 0x197   : > { %v1493_v10 = vpop.eup %1492  ;;  %1097 = vst [vmem:[%s2172_s9 + $0x60] sm:$0xff] %v1264_v21  ;;  %v968_v50 = vmul.f32 %v1491_v1, %v2146_v42  ;;  %1508 = vrcp.f32 %v921_v39 }
 0x198   : > { %v984_v2 = vmul.f32 %v1493_v10, %v2161_v53  ;;  %v1495_v24 = vpop.eup %1494 }
 0x199   : > { %v1257_v36 = vpack.c.bf16 %v968_v50, %v967_v54  ;;  %v1497_v22 = vpop.eup %1496  ;;  %v906_v0 = vadd.f32 1.0, %v1495_v24 }
 0x19a   : > { %v1265_v63 = vpack.c.bf16 %v984_v2, %v983_v11  ;;  %v1499_v16 = vpop.eup %1498  ;;  %v922_v28 = vadd.f32 1.0, %v1497_v22 }
 0x19b   : > { %1090 = vst [vmem:[%s2172_s9 + $0x28] sm:$0xff] %v1257_v36  ;;  %v1501_v5 = vpop.eup %1500  ;;  %1510 = vrcp.f32 %v906_v0  ;;  %v907_v45 = vadd.f32 1.0, %v1499_v16 }
 0x19c   : > { %1098 = vst [vmem:[%s2172_s9 + $0x68] sm:$0xff] %v1265_v63  ;;  %v1503_v25 = vpop.eup %1502  ;;  %1512 = vrcp.f32 %v922_v28  ;;  %v923_v55 = vadd.f32 1.0, %v1501_v5 }
 0x19d   : > { %v1505_v42 = vpop.eup %1504  ;;  %1514 = vrcp.f32 %v907_v45  ;;  %v908_v53 = vadd.f32 1.0, %v1503_v25 }
 0x19e   : > { %1516 = vrcp.f32 %v923_v55  ;;  %v924_v32 = vadd.f32 1.0, %v1505_v42  ;;  %v1507_v46 = vpop.eup %1506 }
 0x19f   : > { %1518 = vrcp.f32 %v908_v53  ;;  %v969_v15 = vmul.f32 %v1507_v46, %v2168_v62 }
 0x1a0   : > { %1520 = vrcp.f32 %v924_v32 }
 0x1a1   : > { %v1509_v38 = vpop.eup %1508 }
 0x1a2   : > { %v985_v6 = vmul.f32 %v1509_v38, %v2179_v51 }
 0x1a5   : > { %v1511_v40 = vpop.eup %1510 }
 0x1a6   : > { %v1513_v44 = vpop.eup %1512  ;;  %v970_v29 = vmul.f32 %v1511_v40, %v2196_v14 }
 0x1a7   : > { %v1515_v19 = vpop.eup %1514  ;;  %v986_v49 = vmul.f32 %v1513_v44, %v2203_v60 }
 0x1a8   : > { %v1517_v52 = vpop.eup %1516  ;;  %v1258_v48 = vpack.c.bf16 %v970_v29, %v969_v15  ;;  %v971_v26 = vmul.f32 %v1515_v19, %v2206_v7 }
 0x1a9   : > { %v1519_v37 = vpop.eup %1518  ;;  %v1266_v62 = vpack.c.bf16 %v986_v49, %v985_v6  ;;  %v987_v56 = vmul.f32 %v1517_v52, %v2208_v34 }
 0x1aa   : > { %v1521_v51 = vpop.eup %1520  ;;  %1091 = vst [vmem:[%s2172_s9 + $0x30] sm:$0xff] %v1258_v48  ;;  %v972_v14 = vmul.f32 %v1519_v37, %v2214_v3 }
 0x1ab   : > { %1099 = vst [vmem:[%s2172_s9 + $0x70] sm:$0xff] %v1266_v62  ;;  %v988_v60 = vmul.f32 %v1521_v51, %v2217_v57 }
 0x1ac   : > { %v1259_v8 = vpack.c.bf16 %v972_v14, %v971_v26 }
 0x1ad   : > { %v1267_v7 = vpack.c.bf16 %v988_v60, %v987_v56 }
 0x1ae   : > { %1092 = vst [vmem:[%s2172_s9 + $0x38] sm:$0xff] %v1259_v8 }
 0x1af   : > { %1100 = vst [vmem:[%s2172_s9 + $0x78] sm:$0xff] %v1267_v7 }
 0x1b0   : > { %1565 = shalt.err (!%p1562_p5)
}
 0x1b1   : > { %s1566_s6 = scalar_lea.hbm %s2256_s27, 2048  ;;  %s1570_s26 = scalar_lea.hbm %s2313_s4, 4096 }
 0x1b2   : > { %p1567_p4 = scmp.ne.s32.totalorder %s2256_s27, %s1566_s6  ;;  %p1571_p12 = scmp.lt.u32.totalorder %s2256_s27, %s2313_s4 }
 0x1b3   : > { %p1572_p1 = scmp.lt.u32.totalorder %s1570_s26, %s1566_s6  ;;  %p1574_p8 = scmp.lt.u32.totalorder %s1566_s6, %s2256_s27 }
 0x1b4   : > { %p1568_p7 = pnand %p1567_p4, %p2321_p9 }
 0x1b5   : > { %p1573_p3 = por %p1572_p1, %p1571_p12 }
 0x1b6   : > { %p1569_p10 = pneg %p1568_p7 }
 0x1b7   : > { %p1575_p11 = por %p1574_p8, %p1573_p3 }
 0x1b9   : > { %p1576_p0 = pnand %p1575_p11, %p1569_p10 }
 0x1bb   : > { %1579 = shalt.err (!%p1576_p0)
}
 0x1bc   : > { %s1641_s11 = smov 128   ;;  %s1642_s24 = smov 8  }
 0x1bd   : > { %1303 = dma.vmem_to_hbm [thread:$0]  (%p2321_p9), %s2258_s21, 2048, %s2256_s27, %s1102_s18, %s1641_s11, %s1641_s11, %s1642_s24  }
 0x1be PF: > { %s1132_s25 = sand.u32 1, %s1614_s15   ;;  %p2322_p6 = scmp.ne.s32.totalorder %s2318_s30, 0 }
 0x1bf   : > { %p2323_p13 = scmp.ge.s32.totalorder %s1634_s20, 2  ;;  %s1133_s10 = scalar_lea.sflag [#allocation4], %s1132_s25 }
 0x1c1   : > { %p1310_p2 = pnand %p2323_p13, %p2322_p6 }
 0x1c3   : > { %1609 = dma.done.wait (!%p1310_p2), %s1133_s10, 2048  }
 0x1c4   : > { %1611 = vsyncadd (!%p1310_p2), %s1133_s10, 4294965248  ;;  %s20_s20 = sadd.s32 1, %s1634_s20   ;;  %s2324_s15 = smov %s1618_s16 }
 0x1c5   : > { %p17_p5 = scmp.ge.s32.totalorder %s20_s20, 4   ;;  %s2325_s16 = smov %s1622_s17 }
 0x1c6   : > { %s2326_s17 = smov %s1724_s29  ;;  %s2327_s18 = smov %s1630_s19 }
 0x1c7   : > { %s2328_s19 = smov %s2330_s23  ;;  %19 = sbr.rel (!%p17_p5) target bundleno = 6 (0x6), region = 81 }
 0x1ce   :  { %1138 = vsyncpa [#allocation3], 1 }
 0x1cf   :  { %1140 = vsyncpa [#allocation3 + $0x1], 1 }
 0x1d0   :  { %1141 = vsyncpa [#allocation4], 1 }
 0x1d1   :  { %1143 = vsyncpa [#allocation4 + $0x1], 1 }

</bundles_post_ra>
